<compile_context>
chip_gen: v7x
topology: tpu7x:2x2x1
jax: 0.10.0
libtpu: 0.0.40
codegen_flags: <defaults>
</compile_context>

<pallas_src>
import jax
import jax.numpy as jnp
from jax.experimental import pallas as pl
from jax.experimental.pallas import tpu as pltpu


def _tlu_kernel(thr_ref, x_ref, o_ref):
    t = thr_ref[0].astype(x_ref.dtype)
    o_ref[...] = jnp.clip(x_ref[...], -t, t)


def _tlu_2d(x2d, thr, *, target_block_bytes, donate):
    """Run the clamp kernel over a lane-dense (rows, W) slab."""
    rows, W = x2d.shape
    dtype = x2d.dtype
    itemsize = jnp.dtype(dtype).itemsize
    # sublane packing: 8 rows for 4-byte, 16 for 2-byte, 32 for 1-byte dtypes
    pack = max(8, 32 // itemsize)

    # ~target_block_bytes per block; keep rows a multiple of the sublane
    # packing so stores stay full unmasked vst.
    tile_rows = max(pack, (target_block_bytes // (W * itemsize)) // pack * pack)

    # Megacore: for inputs above ~2 MiB force at least two grid steps so the
    # "parallel" grid axis can be split across v7x's two TensorCores.
    total_bytes = rows * W * itemsize
    if total_bytes > 2 * 1024 * 1024:
        half_rows = (pl.cdiv(rows, 2) // pack) * pack
        if half_rows >= pack:
            tile_rows = min(tile_rows, half_rows)

    if tile_rows >= rows or rows < pack:
        tile_rows = rows  # single full-array block (always a legal block shape)

    num_steps = pl.cdiv(rows, tile_rows)

    # Deepen input prefetch only when there are enough steps to benefit.
    x_spec_kwargs = {}
    if num_steps >= 3:
        x_spec_kwargs["pipeline_mode"] = pl.Buffered(3)
    x_spec = pl.BlockSpec((tile_rows, W), lambda i: (i, 0), **x_spec_kwargs)

    n = rows * W
    call_kwargs = {}
    if donate:
        # operand 0 is the SMEM threshold, operand 1 is x2d
        call_kwargs["input_output_aliases"] = {1: 0}

    return pl.pallas_call(
        _tlu_kernel,
        out_shape=jax.ShapeDtypeStruct((rows, W), dtype),
        grid_spec=pltpu.PrefetchScalarGridSpec(
            num_scalar_prefetch=0,
            grid=(num_steps,),
            in_specs=[
                pl.BlockSpec(memory_space=pltpu.MemorySpace.SMEM),  # threshold
                x_spec,
            ],
            out_specs=pl.BlockSpec((tile_rows, W), lambda i: (i, 0)),
        ),
        compiler_params=pltpu.CompilerParams(
            dimension_semantics=("parallel",),
            # 3 input + 2 output buffers of 8 MiB blocks = 40 MiB of pipeline
            # buffers; 48 MiB leaves headroom and stays under v7x's 64 MiB
            # physical VMEM (v5e/v6e have 128 MiB).
            vmem_limit_bytes=48 * 1024 * 1024,
        ),
        cost_estimate=pl.CostEstimate(
            flops=2 * n, transcendentals=0, bytes_accessed=2 * n * itemsize
        ),
        **call_kwargs,
    )(thr, x2d)


def tlu(x, threshold, *, target_block_bytes=8 * 1024 * 1024, donate=False):
    """Elementwise clamp(x, -threshold, threshold) via a Pallas TPU kernel.

    x: any shape / float dtype (NCHW in the test). Returns same shape/dtype.
    Set donate=True only when the caller can donate x's buffer (output then
    aliases the input, removing a full-size output allocation).
    """
    orig_shape = x.shape
    dtype = x.dtype
    n = x.size
    if n == 0:
        return x

    thr = jnp.asarray([threshold], dtype=jnp.float32)

    # Pick the widest lane-dense width that evenly divides n (no pad copy).
    W = None
    for cand in (2048, 1024, 512, 256, 128):
        if n % cand == 0:
            W = cand
            break

    if W is not None:
        x2d = x.reshape(n // W, W)  # pure reshape, no HBM copy
        out2d = _tlu_2d(
            x2d, thr, target_block_bytes=target_block_bytes, donate=donate
        )
        return out2d.reshape(orig_shape)

    # Ragged case (n % 128 != 0): run the kernel on the 128-aligned prefix and
    # clamp the <128-element tail with a tiny plain jnp.clip instead of padding
    # + slicing the whole array (saves full extra HBM passes).
    W = 128
    n_main = (n // W) * W
    t = jnp.asarray(threshold, dtype=dtype)
    x_flat = x.reshape(-1)
    if n_main == 0:
        # Whole array smaller than one lane row; a plain fused clip is optimal.
        return jnp.clip(x, -t, t)
    main = x_flat[:n_main].reshape(n_main // W, W)
    main_out = _tlu_2d(
        main, thr, target_block_bytes=target_block_bytes, donate=False
    )
    tail_out = jnp.clip(x_flat[n_main:], -t, t)
    return jnp.concatenate([main_out.reshape(-1), tail_out]).reshape(orig_shape)


if __name__ == "__main__":
    key = jax.random.PRNGKey(0)
    # NCHW input, small shapes: batch=2, channels=4, spatial=16x16
    x = jax.random.normal(key, (2, 4, 16, 16), dtype=jnp.float32) * 3.0
    threshold = 1.0

    out = tlu(x, threshold)
    out = jax.block_until_ready(out)

    # Reference check against plain JAX clamp (== torch.clamp(x, -t, t)).
    ref = jnp.clip(x, -threshold, threshold)
    assert out.shape == x.shape
    assert out.dtype == x.dtype
    assert jnp.allclose(out, ref), "mismatch vs reference clamp"

    print("KERNEL_OK")
</pallas_src>

<mosaic_0001>
module attributes {stable_mosaic.version = 11 : i64} {
  func.func @_tlu_kernel(%arg0: i32, %arg1: memref<1xf32, #tpu.memory_space<smem>>, %arg2: memref<1x2048xf32, #tpu.memory_space<vmem>>, %arg3: memref<1x2048xf32, #tpu.memory_space<vmem>>) attributes {dimension_semantics = [#tpu.dimension_semantics<parallel>], iteration_bounds = array<i64: 1>, scalar_prefetch = 0 : i64, scratch_operands = 0 : i64, tpu.core_type = #tpu.core_type<tc>, window_params = [{transform_indices = @transform_0, window_bounds = array<i64: 1>}, {transform_indices = @transform_1, window_bounds = array<i64: 1, 2048>}, {transform_indices = @transform_2, window_bounds = array<i64: 1, 2048>}]} {
    %c0 = arith.constant 0 : index
    %0 = memref.load %arg1[%c0] : memref<1xf32, #tpu.memory_space<smem>>
    %c0_0 = arith.constant 0 : index
    %c0_1 = arith.constant 0 : index
    %1 = vector.load %arg2[%c0_0, %c0_1] : memref<1x2048xf32, #tpu.memory_space<vmem>>, vector<1x2048xf32>
    %cst = arith.constant 0.000000e+00 : f32
    %2 = arith.subf %cst, %0 : f32
    %3 = vector.broadcast %2 : f32 to vector<1x2048xf32>
    %4 = arith.maximumf %3, %1 : vector<1x2048xf32>
    %5 = vector.broadcast %0 : f32 to vector<1x2048xf32>
    %6 = arith.minimumf %5, %4 : vector<1x2048xf32>
    %c0_2 = arith.constant 0 : index
    %c0_3 = arith.constant 0 : index
    %7 = vector.load %arg3[%c0_2, %c0_3] : memref<1x2048xf32, #tpu.memory_space<vmem>>, vector<1x2048xf32>
    tpu.vector_store %arg3[%c0_2, %c0_3], %6 {strides = array<i32>} : memref<1x2048xf32, #tpu.memory_space<vmem>>, vector<1x2048xf32>,
    return
  }
  func.func @transform_0(%arg0: i32) -> i32 {
    %c0_i32 = arith.constant 0 : i32
    %c0_i32_0 = arith.constant 0 : i32
    return %c0_i32 : i32
  }
  func.func @transform_1(%arg0: i32) -> (i32, i32) {
    %c0_i32 = arith.constant 0 : i32
    %c0_i32_0 = arith.constant 0 : i32
    return %arg0, %c0_i32 : i32, i32
  }
  func.func @transform_2(%arg0: i32) -> (i32, i32) {
    %c0_i32 = arith.constant 0 : i32
    %c0_i32_0 = arith.constant 0 : i32
    return %arg0, %c0_i32 : i32, i32
  }
}

</mosaic_0001>

<bundles_post_ra>
// kernel: tpu_custom_call.1
= control target key start
LH: loop header
LB: loop body
LE: loop exit
PB: predicated region body
PF: predicated region fallthrough
CT: control target
= control target key end

     0   :  { %8 = vsyncpa [#allocation4], 0  ;;  %s149_s0 = inlined_call_operand.<no memory space> [shape: f32[1], index: 0, kind: input, shape index: {}]   ;;  %s150_s1 = inlined_call_operand.hbm [shape: f32[1,2048], index: 1, kind: input, shape index: {}]   ;;  %s151_s2 = inlined_call_operand.hbm [shape: f32[1,2048], index: 2, kind: output, shape index: {}]  }
   0x1   :  { %9 = vsyncpa [#allocation5], 0  ;;  %s102_s9 = smov [#allocation3]   ;;  %s54_s13 = scalar_lea.hbm %s150_s1, 256 }
   0x2   :  { %s18_s10 = sshll.u32 %s102_s9, 4  ;;  %p55_p0 = scmp.ne.s32.totalorder %s150_s1, %s54_s13  ;;  %s19_s10 = int_to_ptr.vmem [resolvable:$true] %s18_s10 }
   0x3   :  { %p58_p1 = scmp.lt.u32.totalorder %s54_s13, %s150_s1 }
   0x5   :  { %p60_p2 = pnand %p58_p1, %p55_p0 }
   0x7   :  { %63 = shalt.err (!%p60_p2)
}
   0x8   :  { %s64_s18 = scalar_lea.vmem %s19_s10, 256  ;;  %p69_p4 = scmp.lt.s32.totalorder %s19_s10, %s19_s10 }
   0x9   :  { %p65_p3 = scmp.ne.s32.totalorder %s19_s10, %s64_s18  ;;  %p70_p5 = scmp.lt.s32.totalorder %s64_s18, %s64_s18 }
   0xb   :  { %p71_p6 = por %p70_p5, %p69_p4 }
   0xd   :  { %p72_p7 = pnand %p71_p6, %p65_p3 }
   0xf   :  { %75 = shalt.err (!%p72_p7)
}
  0x10   :  { %21 = dma.hbm_to_vmem [thread:$0]  %s150_s1, 256, %s19_s10, [#allocation4]  }
  0x11   :  { %98 = dma.done.wait [#allocation4], 256  }
  0x12   :  { %99 = vsyncadd [#allocation4], 4294967040  ;;  %s28_s23 = ssub.f32 0.0, %s149_s0  ;;  %v26_v1 = vld [vmem:[#allocation3] sm:$0xff]  ;;  %v32_v2 = vstv %s149_s0  ;;  %v27_v3 = vld [vmem:[#allocation3 + $0x8] sm:$0xff]  ;;  %s103_s26 = smov [#allocation6]  }
  0x13   :  { %s43_s27 = sshll.u32 %s103_s26, 4  ;;  %s44_s27 = int_to_ptr.vmem [resolvable:$true] %s43_s27 }
  0x14   :  { %v29_v0 = vstv %s28_s23  ;;  %s76_s1 = scalar_lea.vmem %s44_s27, 256  ;;  %p81_p9 = scmp.lt.s32.totalorder %s44_s27, %s44_s27 }
  0x15   :  { %v30_v4 = vmax.f32 %v29_v0, %v26_v1  ;;  %v31_v5 = vmax.f32 %v29_v0, %v27_v3  ;;  %p77_p8 = scmp.ne.s32.totalorder %s44_s27, %s76_s1  ;;  %p82_p10 = scmp.lt.s32.totalorder %s76_s1, %s76_s1 }
  0x17   :  { %v33_v6 = vmin.f32 %v32_v2, %v30_v4  ;;  %v34_v7 = vmin.f32 %v32_v2, %v31_v5  ;;  %p83_p11 = por %p82_p10, %p81_p9 }
  0x19   :  { %35 = vst [vmem:[#allocation6] sm:$0xff] %v33_v6  ;;  %36 = vst [vmem:[#allocation6 + $0x8] sm:$0xff] %v34_v7  ;;  %p84_p12 = pnand %p83_p11, %p77_p8 }
  0x1b   :  { %87 = shalt.err (!%p84_p12)
}
  0x1c   :  { %s88_s0 = scalar_lea.hbm %s151_s2, 256 }
  0x1d   :  { %p89_p13 = scmp.ne.s32.totalorder %s151_s2, %s88_s0  ;;  %p92_p0 = scmp.lt.u32.totalorder %s88_s0, %s151_s2 }
  0x1f   :  { %p94_p1 = pnand %p92_p0, %p89_p13 }
  0x21   :  { %97 = shalt.err (!%p94_p1)
}
  0x22   :  { %46 = dma.vmem_to_hbm [thread:$0]  %s44_s27, 256, %s151_s2, [#allocation5]  }
  0x23   :  { %100 = dma.done.wait [#allocation5], 256  }
  0x24   :  { %101 = vsyncadd [#allocation5], 4294967040 }
  0x25   :  { %50 = vsyncpa [#allocation4], 1 }
  0x26   :  { %51 = vsyncpa [#allocation5], 1 }

</bundles_post_ra>
